<compile_context>
chip_gen: v5e
topology: v5e:2x2
jax: 0.10.0
libtpu: 0.0.40
codegen_flags: <defaults>
</compile_context>

<pallas_src>
import functools
import numpy as np
import jax
import jax.numpy as jnp
from jax.experimental import pallas as pl
from jax.experimental.pallas import tpu as pltpu

# ----------------------------------------------------------------------------
# Irreps description: list of (mul, l, parity). Equivalent of o3.Irreps("8x0e+4x1o+2x2e")
# ----------------------------------------------------------------------------
IRREPS = [(8, 0, 1), (4, 1, -1), (2, 2, 1)]
EPS = 1e-5
DIM = sum(mul * (2 * l + 1) for mul, l, _ in IRREPS)     # 30
PAD = 32                                                 # feature dim padded to 32
PACK = 4                                                 # nodes packed per 128-lane row
LANES = PACK * PAD                                       # 128


# ----------------------------------------------------------------------------
# Static operand construction
# ----------------------------------------------------------------------------
def _per_column_params():
    """Per-column mean_shift / affine weight / bias on the unpadded DIM features
    (module __init__ defaults: mean_shift=1 on scalars else 0, weight=1, bias=0)."""
    ms, w, b = [], [], []
    for mul, l, p in IRREPS:
        d = 2 * l + 1
        is_scalar = (l == 0 and p == 1)
        ms.append(np.full((mul * d,), 1.0 if is_scalar else 0.0, np.float32))
        w.append(np.ones((mul * d,), np.float32))        # affine_weight init = ones
        b.append(np.zeros((mul * d,), np.float32))       # affine_bias init = zeros (scalars only)
    return np.concatenate(ms), np.concatenate(w), np.concatenate(b)


def _build_packed_operands():
    """Build the lane-dense (128x128) structure matrices and the (2,128) param rows.

    M[c,c']  = 1/mul       if c,c' in same irrep block and same component j
               -> x @ M = mean over multiplicity, broadcast back per column.
    V[c,c']  = 1/(mul*d)   if c,c' in same irrep block
               -> (field**2) @ V = 'component' norm averaged over (mul, d), per column.
    M' = I - M @ diag(mean_shift)   (mean-shift folded in:  field = x @ M')
    Everything is padded 30->32 and replicated 4x block-diagonally to 128x128.
    """
    ms, w, b = _per_column_params()

    M = np.zeros((DIM, DIM), np.float32)
    V = np.zeros((DIM, DIM), np.float32)
    ix = 0
    for mul, l, _ in IRREPS:
        d = 2 * l + 1
        size = mul * d
        for j in range(d):
            cols = ix + np.arange(mul) * d + j
            M[np.ix_(cols, cols)] = 1.0 / mul
        V[ix:ix + size, ix:ix + size] = 1.0 / (mul * d)
        ix += size
    assert ix == DIM
    Mp = np.eye(DIM, dtype=np.float32) - M @ np.diag(ms)   # mean-shift folded

    def _pad_tile(A):
        A32 = np.zeros((PAD, PAD), np.float32)
        A32[:DIM, :DIM] = A
        A128 = np.zeros((LANES, LANES), np.float32)
        for k in range(PACK):
            A128[k * PAD:(k + 1) * PAD, k * PAD:(k + 1) * PAD] = A32
        return A128

    def _pad_row(r):
        r32 = np.zeros((PAD,), np.float32)
        r32[:DIM] = r
        return np.tile(r32, PACK)

    mprime128 = _pad_tile(Mp)
    v128 = _pad_tile(V)
    wb128 = np.stack([_pad_row(w), _pad_row(b)], axis=0)   # (2, 128): row0=weight, row1=bias
    return (jnp.asarray(mprime128), jnp.asarray(v128), jnp.asarray(wb128),
            jnp.asarray(ms), jnp.asarray(w), jnp.asarray(b))


# ----------------------------------------------------------------------------
# Pallas kernel: two 128-aligned f32 matmuls + elementwise
# ----------------------------------------------------------------------------
def _layernorm_kernel(x_ref, mprime_ref, v_ref, wb_ref, o_ref):
    x = x_ref[...]                                                    # (TM, 128) f32
    # mean-shift already folded into M':  field = x - mean_over_mul(x) * mean_shift
    field = jnp.dot(x, mprime_ref[...], preferred_element_type=jnp.float32)
    # per-irrep 'component' variance, replicated on every column of its block
    var = jnp.dot(field * field, v_ref[...], preferred_element_type=jnp.float32)
    inv = jax.lax.rsqrt(var + EPS)
    wb = wb_ref[...]                                                  # (2, 128)
    o_ref[...] = field * inv * wb[0:1, :] + wb[1:2, :]


@functools.partial(jax.jit, static_argnames=("tm",))
def equivariant_layernorm(x, mprime, vmat, wb, *, tm=512):
    """x: (n, DIM) f32.  tm = row tile in *packed* rows (each packed row holds PACK nodes)."""
    n, dim = x.shape
    assert dim == DIM
    # Lane-dense repack: pad features 30->32, pack 4 nodes per 128-lane row,
    # and pad the node count so the packed row count divides the tile (ragged-tail safe:
    # zero rows normalize to zero and are sliced off below).
    nodes_per_tile = PACK * tm
    n_pad = (-n) % nodes_per_tile
    x32 = jnp.pad(x, ((0, n_pad), (0, PAD - DIM)))
    n_tot = n + n_pad
    n_packed = n_tot // PACK
    xp = x32.reshape(n_packed, LANES)                     # (n_packed, 128), row-major packing

    row_spec = pl.BlockSpec((tm, LANES), lambda i: (i, 0))
    mat_spec = pl.BlockSpec((LANES, LANES), lambda i: (0, 0))
    wb_spec = pl.BlockSpec((2, LANES), lambda i: (0, 0))

    out = pl.pallas_call(
        _layernorm_kernel,
        out_shape=jax.ShapeDtypeStruct((n_packed, LANES), jnp.float32),
        grid=(n_packed // tm,),
        in_specs=[row_spec, mat_spec, mat_spec, wb_spec],
        out_specs=row_spec,
        compiler_params=pltpu.CompilerParams(
            dimension_semantics=("parallel",),            # shards the row grid across v7x's 2 TCs
            vmem_limit_bytes=32 * 1024 * 1024,            # explicit: safe on v7x's 64 MiB VMEM
        ),
    )(xp, mprime, vmat, wb)
    return out.reshape(n_tot, PAD)[:n, :DIM]


# ----------------------------------------------------------------------------
# Pure-JAX reference (mirrors the PyTorch loop exactly) for verification
# ----------------------------------------------------------------------------
def _reference(x, ms_cols, w_cols, b_cols):
    outs = []
    ix = 0
    for mul, l, p in IRREPS:
        d = 2 * l + 1
        field = x[:, ix:ix + mul * d].reshape(-1, mul, d)
        ms = ms_cols[ix:ix + mul * d].reshape(mul, d)[:, 0]
        w = w_cols[ix:ix + mul * d].reshape(mul, d)[:, 0]
        b = b_cols[ix:ix + mul * d].reshape(mul, d)[:, 0]
        fmean = jnp.mean(field, axis=1, keepdims=True)
        field = field - fmean * ms[None, :, None]
        fnorm = jnp.mean(field ** 2, axis=-1)             # 'component'
        fnorm = jnp.mean(fnorm, axis=1, keepdims=True)
        fnorm = (fnorm + EPS) ** -0.5
        fnorm = fnorm * w[None, :]
        field = field * fnorm[:, :, None]
        if d == 1 and p == 1:
            field = field + b[None, :, None]
        outs.append(field.reshape(-1, mul * d))
        ix += mul * d
    return jnp.concatenate(outs, axis=-1)


if __name__ == "__main__":
    key = jax.random.PRNGKey(0)
    N = 256                                               # small demo shape
    node_input = jax.random.normal(key, (N, DIM), dtype=jnp.float32)

    mprime, vmat, wb, ms_cols, w_cols, b_cols = _build_packed_operands()

    # tm=32 packed rows (128 nodes) -> 2-step grid at this small N (keeps both v7x TCs busy);
    # for production node counts use the default tm=512 (2048 nodes, ~256 KB per buffer).
    out = equivariant_layernorm(node_input, mprime, vmat, wb, tm=32)
    out = jax.block_until_ready(out)

    ref = _reference(node_input, ms_cols, w_cols, b_cols)
    assert out.shape == (N, DIM) and out.dtype == jnp.float32
    if not jnp.allclose(out, ref, atol=1e-4, rtol=1e-4):
        err = float(jnp.max(jnp.abs(out - ref)))
        raise AssertionError(f"Pallas kernel does not match reference (max abs err {err})")

    print("KERNEL_OK")
</pallas_src>

<mosaic_0001>
module attributes {stable_mosaic.version = 11 : i64} {
  func.func @_layernorm_kernel(%arg0: i32, %arg1: memref<32x128xf32, #tpu.memory_space<vmem>>, %arg2: memref<128x128xf32, #tpu.memory_space<vmem>>, %arg3: memref<128x128xf32, #tpu.memory_space<vmem>>, %arg4: memref<2x128xf32, #tpu.memory_space<vmem>>, %arg5: memref<32x128xf32, #tpu.memory_space<vmem>>) attributes {dimension_semantics = [#tpu.dimension_semantics<parallel>], iteration_bounds = array<i64: 2>, scalar_prefetch = 0 : i64, scratch_operands = 0 : i64, tpu.core_type = #tpu.core_type<tc>, window_params = [{transform_indices = @transform_0, window_bounds = array<i64: 32, 128>}, {pipeline_mode = #tpu.pipeline_mode<synchronous>, transform_indices = @transform_1, window_bounds = array<i64: 128, 128>}, {pipeline_mode = #tpu.pipeline_mode<synchronous>, transform_indices = @transform_2, window_bounds = array<i64: 128, 128>}, {pipeline_mode = #tpu.pipeline_mode<synchronous>, transform_indices = @transform_3, window_bounds = array<i64: 2, 128>}, {transform_indices = @transform_4, window_bounds = array<i64: 32, 128>}]} {
    %c0 = arith.constant 0 : index
    %c0_0 = arith.constant 0 : index
    %0 = vector.load %arg1[%c0, %c0_0] : memref<32x128xf32, #tpu.memory_space<vmem>>, vector<32x128xf32>
    %c0_1 = arith.constant 0 : index
    %c0_2 = arith.constant 0 : index
    %1 = vector.load %arg2[%c0_1, %c0_2] : memref<128x128xf32, #tpu.memory_space<vmem>>, vector<128x128xf32>
    %cst = arith.constant dense<0.000000e+00> : vector<32x128xf32>
    %2 = tpu.matmul %0, %1, %cst {dimension_numbers = #tpu.dot_dimension_numbers<[1], [0], [0], [1], [0, 0, 1, 1], [], []>} : vector<32x128xf32>, vector<128x128xf32>, vector<32x128xf32> -> vector<32x128xf32>
    %3 = arith.mulf %2, %2 : vector<32x128xf32>
    %c0_3 = arith.constant 0 : index
    %c0_4 = arith.constant 0 : index
    %4 = vector.load %arg3[%c0_3, %c0_4] : memref<128x128xf32, #tpu.memory_space<vmem>>, vector<128x128xf32>
    %cst_5 = arith.constant dense<0.000000e+00> : vector<32x128xf32>
    %5 = tpu.matmul %3, %4, %cst_5 {dimension_numbers = #tpu.dot_dimension_numbers<[1], [0], [0], [1], [0, 0, 1, 1], [], []>} : vector<32x128xf32>, vector<128x128xf32>, vector<32x128xf32> -> vector<32x128xf32>
    %cst_6 = arith.constant 9.99999974E-6 : f32
    %6 = vector.broadcast %cst_6 : f32 to vector<32x128xf32>
    %7 = arith.addf %5, %6 : vector<32x128xf32>
    %8 = math.rsqrt %7 : vector<32x128xf32>
    %c0_7 = arith.constant 0 : index
    %c0_8 = arith.constant 0 : index
    %9 = vector.load %arg4[%c0_7, %c0_8] : memref<2x128xf32, #tpu.memory_space<vmem>>, vector<2x128xf32>
    %10 = arith.mulf %2, %8 : vector<32x128xf32>
    %11 = vector.extract_strided_slice %9 {offsets = [0, 0], sizes = [1, 128], strides = [1, 1]} : vector<2x128xf32> to vector<1x128xf32>
    %12 = vector.broadcast %11 : vector<1x128xf32> to vector<32x128xf32>
    %13 = arith.mulf %10, %12 : vector<32x128xf32>
    %14 = vector.extract_strided_slice %9 {offsets = [1, 0], sizes = [1, 128], strides = [1, 1]} : vector<2x128xf32> to vector<1x128xf32>
    %15 = vector.broadcast %14 : vector<1x128xf32> to vector<32x128xf32>
    %16 = arith.addf %13, %15 : vector<32x128xf32>
    %c0_9 = arith.constant 0 : index
    %c0_10 = arith.constant 0 : index
    %17 = vector.load %arg5[%c0_9, %c0_10] : memref<32x128xf32, #tpu.memory_space<vmem>>, vector<32x128xf32>
    tpu.vector_store %arg5[%c0_9, %c0_10], %16 {strides = array<i32>} : memref<32x128xf32, #tpu.memory_space<vmem>>, vector<32x128xf32>,
    return
  }
  func.func @transform_0(%arg0: i32) -> (i32, i32) {
    %c0_i32 = arith.constant 0 : i32
    %c0_i32_0 = arith.constant 0 : i32
    return %arg0, %c0_i32 : i32, i32
  }
  func.func @transform_1(%arg0: i32) -> (i32, i32) {
    %c0_i32 = arith.constant 0 : i32
    %c0_i32_0 = arith.constant 0 : i32
    %c0_i32_1 = arith.constant 0 : i32
    return %c0_i32, %c0_i32_0 : i32, i32
  }
  func.func @transform_2(%arg0: i32) -> (i32, i32) {
    %c0_i32 = arith.constant 0 : i32
    %c0_i32_0 = arith.constant 0 : i32
    %c0_i32_1 = arith.constant 0 : i32
    return %c0_i32, %c0_i32_0 : i32, i32
  }
  func.func @transform_3(%arg0: i32) -> (i32, i32) {
    %c0_i32 = arith.constant 0 : i32
    %c0_i32_0 = arith.constant 0 : i32
    %c0_i32_1 = arith.constant 0 : i32
    return %c0_i32, %c0_i32_0 : i32, i32
  }
  func.func @transform_4(%arg0: i32) -> (i32, i32) {
    %c0_i32 = arith.constant 0 : i32
    %c0_i32_0 = arith.constant 0 : i32
    return %arg0, %c0_i32 : i32, i32
  }
}

</mosaic_0001>

<bundles_post_ra>
// kernel: equivariant_layernorm.1
= control target key start
LH: loop header
LB: loop body
LE: loop exit
PB: predicated region body
PF: predicated region fallthrough
CT: control target
= control target key end

     0   :  { %s506_s15 = smov 0   ;;  %s647_s0 = inlined_call_operand.vmem [shape: f32[64,128], index: 0, kind: input, shape index: {}]   ;;  %s648_s1 = inlined_call_operand.vmem [shape: f32[128,128], index: 1, kind: input, shape index: {}]   ;;  %s649_s2 = inlined_call_operand.vmem [shape: f32[128,128], index: 2, kind: input, shape index: {}]   ;;  %s650_s3 = inlined_call_operand.vmem [shape: f32[2,128], index: 3, kind: input, shape index: {}]   ;;  %s651_s4 = inlined_call_operand.vmem [shape: f32[64,128], index: 4, kind: output, shape index: {}]  }
   0x1 LB: > { %s414_s16 = sadd.s32 4294967295, %s479_s15   ;;  %p418_p0 = scmp.ge.s32.totalorder %s479_s15, 1  ;;  %s479_s15 = sphi %s506_s15, %s14_s15  }
   0x2   : > { %p163_p1 = scmp.lt.s32.totalorder %s479_s15, 3 }
   0x4   : > { %p164_p2 = pnand %p418_p0, %p163_p1 }
   0x5   : > { %s419_s13 = sshll.u32 (!%p164_p2), %s414_s16, 2 }
   0x6   : > { %167 = sbr.rel (%p164_p2) target bundleno = 344 (0x158), region = 36  ;;  %p190_p3 = scmp.lt.s32.totalorder (!%p164_p2), %s419_s13, 7 }
   0xb   : > { %v220_v0 = vld [vmem:[%s648_s1 + $0x78] sm:$0xff]  ;;  %v219_v1 = vld [vmem:[%s648_s1 + $0x70] sm:$0xff]  ;;  %v218_v2 = vld [vmem:[%s648_s1 + $0x68] sm:$0xff]  ;;  %s653_s13 = smov (!%p190_p3, %s419_s13), 7 }
   0xc   : > { %221 = vmatpush.msra.mxu0 %v220_v0  ;;  %425 = vmatpush.msra.mxu2 %v220_v0  ;;  %v217_v3 = vld [vmem:[%s648_s1 + $0x60] sm:$0xff]  ;;  %v216_v4 = vld [vmem:[%s648_s1 + $0x58] sm:$0xff]  ;;  %v215_v5 = vld [vmem:[%s648_s1 + $0x50] sm:$0xff]  ;;  %s420_s9 = sshll.u32 %s653_s13, 3 }
   0xd   : > { %v269_v6 = vld [vmem:[%s649_s2 + $0x78] sm:$0xff]  ;;  %v268_v7 = vld [vmem:[%s649_s2 + $0x70] sm:$0xff]  ;;  %v214_v8 = vld [vmem:[%s648_s1 + $0x48] sm:$0xff]  ;;  %s193_s22 = scalar_lea.vmem %s647_s0, %s420_s9  ;;  %s636_s19 = scalar_lea.vmem %s651_s4, %s420_s9 }
   0xe   : > { %222 = vmatpush.msra.mxu0 %v219_v1  ;;  %426 = vmatpush.msra.mxu2 %v219_v1  ;;  %v267_v9 = vld [vmem:[%s649_s2 + $0x68] sm:$0xff]  ;;  %v213_v10 = vld [vmem:[%s648_s1 + $0x40] sm:$0xff]  ;;  %v212_v12 = vld [vmem:[%s648_s1 + $0x38] sm:$0xff] }
   0xf   : > { %270 = vmatpush.msra.mxu1 %v269_v6  ;;  %441 = vmatpush.msra.mxu3 %v269_v6  ;;  %v266_v11 = vld [vmem:[%s649_s2 + $0x60] sm:$0xff]  ;;  %v265_v13 = vld [vmem:[%s649_s2 + $0x58] sm:$0xff]  ;;  %v211_v14 = vld [vmem:[%s648_s1 + $0x30] sm:$0xff] }
  0x10   : > { %223 = vmatpush.msra.mxu0 %v218_v2  ;;  %427 = vmatpush.msra.mxu2 %v218_v2  ;;  %v264_v15 = vld [vmem:[%s649_s2 + $0x50] sm:$0xff]  ;;  %v210_v16 = vld [vmem:[%s648_s1 + $0x28] sm:$0xff]  ;;  %v209_v18 = vld [vmem:[%s648_s1 + $0x20] sm:$0xff] }
  0x11   : > { %271 = vmatpush.msra.mxu1 %v268_v7  ;;  %442 = vmatpush.msra.mxu3 %v268_v7  ;;  %v263_v17 = vld [vmem:[%s649_s2 + $0x48] sm:$0xff]  ;;  %v262_v19 = vld [vmem:[%s649_s2 + $0x40] sm:$0xff]  ;;  %v208_v20 = vld [vmem:[%s648_s1 + $0x18] sm:$0xff] }
  0x12   : > { %224 = vmatpush.msra.mxu0 %v217_v3  ;;  %428 = vmatpush.msra.mxu2 %v217_v3  ;;  %v261_v21 = vld [vmem:[%s649_s2 + $0x38] sm:$0xff]  ;;  %v207_v22 = vld [vmem:[%s648_s1 + $0x10] sm:$0xff]  ;;  %v206_v24 = vld [vmem:[%s648_s1 + $0x8] sm:$0xff] }
  0x13   : > { %272 = vmatpush.msra.mxu1 %v267_v9  ;;  %443 = vmatpush.msra.mxu3 %v267_v9  ;;  %v260_v23 = vld [vmem:[%s649_s2 + $0x30] sm:$0xff]  ;;  %v259_v25 = vld [vmem:[%s649_s2 + $0x28] sm:$0xff]  ;;  %v205_v26 = vld [vmem:[%s648_s1] sm:$0xff] }
  0x14   : > { %225 = vmatpush.msra.mxu0 %v216_v4  ;;  %429 = vmatpush.msra.mxu2 %v216_v4  ;;  %v201_v27 = vld [vmem:[%s193_s22] sm:$0xff]  ;;  %v203_v28 = vld [vmem:[%s193_s22 + $0x10] sm:$0xff]  ;;  %v257_v30 = vld [vmem:[%s649_s2 + $0x18] sm:$0xff] }
  0x15   : > { %273 = vmatpush.msra.mxu1 %v266_v11  ;;  %444 = vmatpush.msra.mxu3 %v266_v11  ;;  %v258_v29 = vld [vmem:[%s649_s2 + $0x20] sm:$0xff]  ;;  %v256_v31 = vld [vmem:[%s649_s2 + $0x10] sm:$0xff]  ;;  %v202_v32 = vld [vmem:[%s193_s22 + $0x8] sm:$0xff] }
  0x16   : > { %226 = vmatpush.msra.mxu0 %v215_v5  ;;  %430 = vmatpush.msra.mxu2 %v215_v5  ;;  %v204_v33 = vld [vmem:[%s193_s22 + $0x18] sm:$0xff]  ;;  %v255_v34 = vld [vmem:[%s649_s2 + $0x8] sm:$0xff]  ;;  %v254_v35 = vld [vmem:[%s649_s2] sm:$0xff] }
  0x17   : > { %274 = vmatpush.msra.mxu1 %v265_v13  ;;  %445 = vmatpush.msra.mxu3 %v265_v13  ;;  %v339_v55 = vld [vmem:[%s650_s3] sm:$0x3] }
  0x18   : > { %227 = vmatpush.msra.mxu0 %v214_v8  ;;  %431 = vmatpush.msra.mxu2 %v214_v8  ;;  %v344_v59 = vperm.slane %v339_v55, 0  ;;  %v349_v1 = vperm.slane %v339_v55, 1 }
  0x19   : > { %275 = vmatpush.msra.mxu1 %v264_v15  ;;  %446 = vmatpush.msra.mxu3 %v264_v15 }
  0x1a   : > { %228 = vmatpush.msra.mxu0 %v213_v10  ;;  %432 = vmatpush.msra.mxu2 %v213_v10 }
  0x1b   : > { %276 = vmatpush.msra.mxu1 %v263_v17  ;;  %447 = vmatpush.msra.mxu3 %v263_v17 }
  0x1c   : > { %229 = vmatpush.msra.mxu0 %v212_v12  ;;  %433 = vmatpush.msra.mxu2 %v212_v12 }
  0x1d   : > { %277 = vmatpush.msra.mxu1 %v262_v19  ;;  %448 = vmatpush.msra.mxu3 %v262_v19 }
  0x1e   : > { %230 = vmatpush.msra.mxu0 %v211_v14  ;;  %434 = vmatpush.msra.mxu2 %v211_v14 }
  0x1f   : > { %278 = vmatpush.msra.mxu1 %v261_v21  ;;  %449 = vmatpush.msra.mxu3 %v261_v21 }
  0x20   : > { %231 = vmatpush.msra.mxu0 %v210_v16  ;;  %435 = vmatpush.msra.mxu2 %v210_v16 }
  0x21   : > { %279 = vmatpush.msra.mxu1 %v260_v23  ;;  %450 = vmatpush.msra.mxu3 %v260_v23 }
  0x22   : > { %232 = vmatpush.msra.mxu0 %v209_v18  ;;  %436 = vmatpush.msra.mxu2 %v209_v18 }
  0x23   : > { %280 = vmatpush.msra.mxu1 %v259_v25  ;;  %451 = vmatpush.msra.mxu3 %v259_v25 }
  0x24   : > { %233 = vmatpush.msra.mxu0 %v208_v20  ;;  %437 = vmatpush.msra.mxu2 %v208_v20 }
  0x25   : > { %281 = vmatpush.msra.mxu1 %v258_v29  ;;  %452 = vmatpush.msra.mxu3 %v258_v29 }
  0x26   : > { %234 = vmatpush.msra.mxu0 %v207_v22  ;;  %438 = vmatpush.msra.mxu2 %v207_v22 }
  0x27   : > { %282 = vmatpush.msra.mxu1 %v257_v30  ;;  %453 = vmatpush.msra.mxu3 %v257_v30 }
  0x28   : > { %235 = vmatpush.msra.mxu0 %v206_v24  ;;  %439 = vmatpush.msra.mxu2 %v206_v24 }
  0x29   : > { %283 = vmatpush.msra.mxu1 %v256_v31  ;;  %454 = vmatpush.msra.mxu3 %v256_v31 }
  0x2a   : > { %236 = vmatpush.msra.mxu0 %v205_v26  ;;  %440 = vmatpush.msra.mxu2 %v205_v26 }
  0x2b   : > { %237 = vmatmul.f32.vlgmr.msra.gmra.mxu0 %v201_v27  ;;  %243 = vmatmul.f32.vlgmr.msra.gmra.mxu2 %v203_v28 }
  0x2c   : > { %284 = vmatpush.msra.mxu1 %v255_v34  ;;  %455 = vmatpush.msra.mxu3 %v255_v34 }
  0x2e   : > { %285 = vmatpush.msra.mxu1 %v254_v35  ;;  %456 = vmatpush.msra.mxu3 %v254_v35 }
  0x33   : > { %240 = vmatmul.f32.gmra.mxu0 %v202_v32  ;;  %246 = vmatmul.f32.gmra.mxu2 %v204_v33 }
  0xa8   : > { %v238_v36 = vpop.f32.mrf.mxu0 }
  0xa9   : > { %v250_v37 = vmul.f32 %v238_v36, %v238_v36 }
  0xab   : > { %286 = vmatmul.f32.vlgmr.msra.gmra.mxu1 %v250_v37 }
  0xae   : > { %v620_v38 = vpop.f32.mrf.mxu2 }
  0xaf   : > { %v252_v39 = vmul.f32 %v620_v38, %v620_v38 }
  0xb0   : > { %v241_v40 = vpop.f32.mrf.mxu0 }
  0xb1   : > { %v251_v41 = vmul.f32 %v241_v40, %v241_v40  ;;  %292 = vmatmul.f32.vlgmr.msra.gmra.mxu3 %v252_v39 }
  0xb3   : > { %289 = vmatmul.f32.gmra.mxu1 %v251_v41 }
  0xb6   : > { %v624_v42 = vpop.f32.mrf.mxu2 }
  0xb7   : > { %v253_v43 = vmul.f32 %v624_v42, %v624_v42 }
  0xb9   : > { %295 = vmatmul.f32.gmra.mxu3 %v253_v43 }
 0x128   : > { %v287_v44 = vpop.f32.mrf.mxu1 }
 0x129   : > { %v288_v45 = vadd.f32 1e-05, %v287_v44 }
 0x12b   : > { %465 = vrsqrt.f32 %v288_v45  ;;  %vm305_vm0 = vweird.f32 %v288_v45 }
 0x130   : > { %v290_v46 = vpop.f32.mrf.mxu1 }
 0x131   : > { %v466_v47 = vpop.eup %465  ;;  %v291_v48 = vadd.f32 1e-05, %v290_v46 }
 0x132   : > { %v300_v49 = vmul.f32 %v466_v47, %v288_v45  ;;  %vm306_vm1 = vweird.f32 %v466_v47 }
 0x133   : > { %467 = vrsqrt.f32 %v291_v48  ;;  %vm307_vm2 = vmor %vm305_vm0, %vm306_vm1  ;;  %vm315_vm3 = vweird.f32 %v291_v48 }
 0x134   : > { %v301_v50 = vmul.f32 %v466_v47, %v300_v49  ;;  %v293_v51 = vpop.f32.mrf.mxu3 }
 0x135   : > { %v294_v52 = vadd.f32 1e-05, %v293_v51 }
 0x136   : > { %v302_v53 = vmul.f32 0.5, %v301_v50 }
 0x137   : > { %469 = vrsqrt.f32 %v294_v52  ;;  %vm325_vm7 = vweird.f32 %v294_v52 }
 0x138   : > { %v303_v54 = vsub.f32 1.5, %v302_v53 }
 0x139   : > { %v468_v56 = vpop.eup %467 }
 0x13a   : > { %v304_v57 = vmul.f32 %v466_v47, %v303_v54  ;;  %v310_v58 = vmul.f32 %v468_v56, %v291_v48  ;;  %vm316_vm4 = vweird.f32 %v468_v56 }
 0x13b   : > { %vm317_vm5 = vmor %vm315_vm3, %vm316_vm4 }
 0x13c   : > { %v308_v60 = vsel %vm307_vm2, %v466_v47, %v304_v57  ;;  %v311_v61 = vmul.f32 %v468_v56, %v310_v58  ;;  %v296_v62 = vpop.f32.mrf.mxu3 }
 0x13d   : > { %v470_v63 = vpop.eup %469  ;;  %v340_v0 = vmul.f32 %v308_v60, %v238_v36  ;;  %v297_v2 = vadd.f32 1e-05, %v296_v62 }
 0x13e   : > { %v312_v3 = vmul.f32 0.5, %v311_v61  ;;  %v320_v4 = vmul.f32 %v470_v63, %v294_v52  ;;  %vm326_vm6 = vweird.f32 %v470_v63 }
 0x13f   : > { %v345_v5 = vmul.f32 %v344_v59, %v340_v0  ;;  %471 = vrsqrt.f32 %v297_v2  ;;  %vm327_vm8 = vmor %vm325_vm7, %vm326_vm6  ;;  %vm335_vm10 = vweird.f32 %v297_v2 }
 0x140   : > { %v313_v6 = vsub.f32 1.5, %v312_v3  ;;  %v321_v7 = vmul.f32 %v470_v63, %v320_v4 }
 0x141   : > { %v350_v8 = vadd.f32 %v349_v1, %v345_v5 }
 0x142   : > { %v314_v9 = vmul.f32 %v468_v56, %v313_v6  ;;  %v322_v10 = vmul.f32 0.5, %v321_v7 }
 0x143   : > { %354 = vst [vmem:[%s636_s19] sm:$0xff] %v350_v8 }
 0x144   : > { %v318_v11 = vsel %vm317_vm5, %v468_v56, %v314_v9  ;;  %v323_v12 = vsub.f32 1.5, %v322_v10 }
 0x145   : > { %v472_v13 = vpop.eup %471  ;;  %v341_v14 = vmul.f32 %v318_v11, %v241_v40 }
 0x146   : > { %v324_v15 = vmul.f32 %v470_v63, %v323_v12  ;;  %v330_v16 = vmul.f32 %v472_v13, %v297_v2  ;;  %vm336_vm9 = vweird.f32 %v472_v13 }
 0x147   : > { %v346_v17 = vmul.f32 %v344_v59, %v341_v14  ;;  %vm337_vm11 = vmor %vm335_vm10, %vm336_vm9 }
 0x148   : > { %v328_v18 = vsel %vm327_vm8, %v470_v63, %v324_v15  ;;  %v331_v19 = vmul.f32 %v472_v13, %v330_v16 }
 0x149   : > { %v351_v20 = vadd.f32 %v349_v1, %v346_v17  ;;  %v342_v21 = vmul.f32 %v328_v18, %v620_v38 }
 0x14a   : > { %v332_v22 = vmul.f32 0.5, %v331_v19 }
 0x14b   : > { %355 = vst [vmem:[%s636_s19 + $0x8] sm:$0xff] %v351_v20  ;;  %v347_v23 = vmul.f32 %v344_v59, %v342_v21 }
 0x14c   : > { %v333_v24 = vsub.f32 1.5, %v332_v22 }
 0x14d   : > { %v352_v25 = vadd.f32 %v349_v1, %v347_v23 }
 0x14e   : > { %v334_v26 = vmul.f32 %v472_v13, %v333_v24 }
 0x14f   : > { %356 = vst [vmem:[%s636_s19 + $0x10] sm:$0xff] %v352_v25 }
 0x150   : > { %v338_v27 = vsel %vm337_vm11, %v472_v13, %v334_v26 }
 0x151   : > { %v343_v28 = vmul.f32 %v338_v27, %v624_v42 }
 0x153   : > { %v348_v29 = vmul.f32 %v344_v59, %v343_v28 }
 0x155   : > { %v353_v30 = vadd.f32 %v349_v1, %v348_v29 }
 0x157   : > { %357 = vst [vmem:[%s636_s19 + $0x18] sm:$0xff] %v353_v30 }
 0x158 PF: > { %s14_s15 = sadd.s32 1, %s479_s15  }
 0x159   : > { %p11_p4 = scmp.ge.s32.totalorder %s14_s15, 4  }
 0x15b   :  { %13 = sbr.rel (!%p11_p4) target bundleno = 1 (0x1), region = 66 }

</bundles_post_ra>
